<compile_context>
chip_gen: v6e
topology: v6e:2x2x1
jax: 0.10.0
libtpu: 0.0.40
codegen_flags: <defaults>
</compile_context>

<pallas_src>
import functools

import jax
import jax.numpy as jnp
from jax.experimental import pallas as pl
from jax.experimental.pallas import tpu as pltpu

EPS = 1e-5


def _round_up(v, m):
    return ((v + m - 1) // m) * m


def _vmem_capacity_bytes():
    """Physical VMEM per core (64 MiB on v7x, 128 MiB on v5e/v6e); safe fallback."""
    try:
        info = pltpu.get_tpu_info()
        cap = int(getattr(info, "vmem_capacity_bytes", 0) or 0)
        if cap > 0:
            return cap
    except Exception:
        pass
    return 64 * 1024 * 1024  # conservative (v7x) default if query unavailable


def _padded_bytes(n, c, hw, itemsize):
    """VMEM footprint of an (n, c, hw) block after (8, 128) layout padding."""
    return n * _round_up(c, 8) * _round_up(hw, 128) * itemsize


# ------------------------- VMEM-resident (single-pass) path -------------------------

def _bn_resident_kernel(x_ref, w_ref, b_ref, o_ref):
    # x_ref: (N, C, HW); w_ref/b_ref: (1, C, 1)
    x = x_ref[...].astype(jnp.float32)
    inv_cnt = 1.0 / (x.shape[0] * x.shape[2])
    s = jnp.sum(jnp.sum(x, axis=2, keepdims=True), axis=0, keepdims=True)
    sq = jnp.sum(jnp.sum(x * x, axis=2, keepdims=True), axis=0, keepdims=True)
    mean = s * inv_cnt
    var = jnp.maximum(sq * inv_cnt - mean * mean, 0.0)
    scale = w_ref[...] * jax.lax.rsqrt(var + EPS)   # (1, C, 1)
    shift = b_ref[...] - mean * scale               # (1, C, 1)
    o_ref[...] = (x * scale + shift).astype(o_ref.dtype)


def _bn_resident(x3, weight, bias, vmem_limit):
    N, C, HW = x3.shape
    w3 = weight.reshape(1, C, 1).astype(jnp.float32)
    b3 = bias.reshape(1, C, 1).astype(jnp.float32)
    return pl.pallas_call(
        _bn_resident_kernel,
        out_shape=jax.ShapeDtypeStruct((N, C, HW), x3.dtype),
        grid=(1,),
        in_specs=[
            pl.BlockSpec((N, C, HW), lambda i: (0, 0, 0)),
            pl.BlockSpec((1, C, 1), lambda i: (0, 0, 0)),
            pl.BlockSpec((1, C, 1), lambda i: (0, 0, 0)),
        ],
        out_specs=pl.BlockSpec((N, C, HW), lambda i: (0, 0, 0)),
        compiler_params=pltpu.CompilerParams(
            dimension_semantics=("arbitrary",),
            vmem_limit_bytes=vmem_limit),
    )(x3, w3, b3)


# ----------------------------------- tiled path -----------------------------------

def _bn_partial_kernel(x_ref, p_ref):
    # x_ref: (tn, C, thw) -> packed per-tile partials (1, C, 2): [:, :, 0]=sum, [:, :, 1]=sumsq
    x = x_ref[...].astype(jnp.float32)
    s = jnp.sum(jnp.sum(x, axis=2, keepdims=True), axis=0, keepdims=True)
    sq = jnp.sum(jnp.sum(x * x, axis=2, keepdims=True), axis=0, keepdims=True)
    p_ref[...] = jnp.concatenate([s, sq], axis=2)   # single packed store


def _bn_apply_kernel(x_ref, p_ref, w_ref, b_ref, o_ref, *, inv_count):
    # Fused epilogue: fold tiny resident partials (G, C, 2) into per-channel
    # scale/shift in-kernel (free under DMA slack), then one mul+add per element.
    p = p_ref[...]                                        # (G, C, 2) f32
    s = jnp.sum(p[..., 0:1], axis=0, keepdims=True)       # (1, C, 1)
    sq = jnp.sum(p[..., 1:2], axis=0, keepdims=True)      # (1, C, 1)
    mean = s * inv_count
    var = jnp.maximum(sq * inv_count - mean * mean, 0.0)
    scale = w_ref[...] * jax.lax.rsqrt(var + EPS)         # (1, C, 1)
    shift = b_ref[...] - mean * scale                     # (1, C, 1)
    o_ref[...] = (x_ref[...].astype(jnp.float32) * scale + shift).astype(o_ref.dtype)


def _bn_tiled(x3, weight, bias, tn, thw, vmem_limit):
    N, C, HW = x3.shape
    assert N % tn == 0 and HW % thw == 0, "forced tiles must divide (N, H*W)"
    nt, kt = N // tn, HW // thw
    G = nt * kt
    w3 = weight.reshape(1, C, 1).astype(jnp.float32)
    b3 = bias.reshape(1, C, 1).astype(jnp.float32)
    params = pltpu.CompilerParams(
        dimension_semantics=("parallel", "parallel"),
        vmem_limit_bytes=vmem_limit)

    # Pass 1: per-(N-tile, HW-tile) packed partial moments (fully parallel).
    partials = pl.pallas_call(
        _bn_partial_kernel,
        out_shape=jax.ShapeDtypeStruct((G, C, 2), jnp.float32),
        grid=(nt, kt),
        in_specs=[pl.BlockSpec((tn, C, thw), lambda i, k: (i, 0, k))],
        out_specs=pl.BlockSpec((1, C, 2), lambda i, k: (i * kt + k, 0, 0)),
        compiler_params=params,
    )(x3)

    # Pass 2: stream tiles again; partials/weight/bias stay resident (constant index
    # map), per-channel scale/shift is recomputed in-kernel (tiny), stores lane-dense.
    inv_count = 1.0 / float(N * HW)
    return pl.pallas_call(
        functools.partial(_bn_apply_kernel, inv_count=inv_count),
        out_shape=jax.ShapeDtypeStruct((N, C, HW), x3.dtype),
        grid=(nt, kt),
        in_specs=[
            pl.BlockSpec((tn, C, thw), lambda i, k: (i, 0, k)),
            pl.BlockSpec((G, C, 2), lambda i, k: (0, 0, 0)),
            pl.BlockSpec((1, C, 1), lambda i, k: (0, 0, 0)),
            pl.BlockSpec((1, C, 1), lambda i, k: (0, 0, 0)),
        ],
        out_specs=pl.BlockSpec((tn, C, thw), lambda i, k: (i, 0, k)),
        compiler_params=params,
    )(x3, partials, w3, b3)


def _pick_tiles(N, C, HW, itemsize, vmem_cap):
    """Pick (tn, thw): blocks up to ~4-8 MiB (generation-aware), >= 2 grid steps."""
    cpad = _round_up(C, 8)
    budget = min(8 << 20, vmem_cap // 10)   # ~6.4 MiB on v7x, 8 MiB on v5e/v6e
    hw_opts = [t for t in range(128, HW + 1, 128) if HW % t == 0] or [HW]
    n_opts = [d for d in range(1, N + 1) if N % d == 0]
    best, best_key = None, None
    for thw in hw_opts:
        for tn in n_opts:
            blk = tn * cpad * _round_up(thw, 128) * itemsize
            steps = (N // tn) * (HW // thw)
            fits = blk <= budget
            # prefer: fits budget; then >= 2 steps (megacore); then largest block
            # (HBM roofline); then more steps.  If nothing fits, smallest block.
            key = (fits, (min(steps, 2) if fits else 0),
                   (blk if fits else -blk), steps)
            if best_key is None or key > best_key:
                best_key, best = key, (tn, thw)
    return best


# ------------------------------------ wrapper ------------------------------------

def batchnorm2d(x_nchw, weight, bias, *, tiles=None):
    """Training-mode BatchNorm2d forward using batch statistics (biased variance).

    tiles: optional (tn, thw) to force the two-pass tiled path.
    """
    N, C, H, W = x_nchw.shape
    HW = H * W
    x3 = x_nchw.reshape(N, C, HW)        # free, contiguous reshape — no transposes
    itemsize = jnp.dtype(x3.dtype).itemsize

    vmem_cap = _vmem_capacity_bytes()
    vmem_limit = int(vmem_cap * 0.8)
    footprint = _padded_bytes(N, C, HW, itemsize)

    # Resident single-pass (1R+1W HBM traffic) whenever input + output blocks fit
    # VMEM, conservatively assuming each is double-buffered (4x one footprint).
    if tiles is None and 4 * footprint <= int(vmem_cap * 0.7):
        out3 = _bn_resident(x3, weight, bias, vmem_limit)
    else:
        tn, thw = tiles if tiles is not None else _pick_tiles(N, C, HW, itemsize, vmem_cap)
        out3 = _bn_tiled(x3, weight, bias, tn, thw, vmem_limit)

    return out3.reshape(N, C, H, W)


# ----------------------------------- reference -----------------------------------

def _reference(x_nchw, weight, bias):
    mean = jnp.mean(x_nchw, axis=(0, 2, 3), keepdims=True)
    var = jnp.mean((x_nchw - mean) ** 2, axis=(0, 2, 3), keepdims=True)
    return ((x_nchw - mean) * jax.lax.rsqrt(var + EPS)
            * weight.reshape(1, -1, 1, 1) + bias.reshape(1, -1, 1, 1))


if __name__ == "__main__":
    key = jax.random.PRNGKey(0)
    N, C, H, W = 2, 5, 16, 16                        # BatchNorm2d(5) -> C = 5
    x = jax.random.normal(key, (N, C, H, W), dtype=jnp.float32)

    # PyTorch default BatchNorm2d affine init: weight (gamma) = 1, bias (beta) = 0
    weight = jnp.ones((C,), dtype=jnp.float32)
    bias = jnp.zeros((C,), dtype=jnp.float32)

    # VMEM-resident single-pass path
    out = jax.block_until_ready(batchnorm2d(x, weight, bias))
    ref = _reference(x, weight, bias)
    assert out.shape == (N, C, H, W)
    assert jnp.allclose(out, ref, atol=1e-5, rtol=1e-5)

    # Forced two-pass tiled path: (N tiles x HW tiles) = (2 x 2) grid exercises the
    # megacore-parallel grid, packed partials, and the fused in-kernel epilogue.
    x2 = jax.random.normal(jax.random.PRNGKey(1), (4, C, 32, 32), dtype=jnp.float32)
    out2 = jax.block_until_ready(batchnorm2d(x2, weight, bias, tiles=(2, 512)))
    ref2 = _reference(x2, weight, bias)
    assert jnp.allclose(out2, ref2, atol=1e-4, rtol=1e-4)

    # Tiled path with a non-128-multiple H*W (full-extent lane block) — the case the
    # previous version could only handle via a whole-array fallback.
    x3_ = jax.random.normal(jax.random.PRNGKey(2), (2, C, 14, 14), dtype=jnp.float32)
    out3_ = jax.block_until_ready(batchnorm2d(x3_, weight, bias, tiles=(1, 196)))
    ref3_ = _reference(x3_, weight, bias)
    assert jnp.allclose(out3_, ref3_, atol=1e-4, rtol=1e-4)

    print("KERNEL_OK")
</pallas_src>

<mosaic_0001>
module attributes {stable_mosaic.version = 11 : i64} {
  func.func @_bn_resident_kernel(%arg0: i32, %arg1: memref<2x5x256xf32, #tpu.memory_space<vmem>>, %arg2: memref<1x5x1xf32, #tpu.memory_space<vmem>>, %arg3: memref<1x5x1xf32, #tpu.memory_space<vmem>>, %arg4: memref<2x5x256xf32, #tpu.memory_space<vmem>>) attributes {dimension_semantics = [#tpu.dimension_semantics<arbitrary>], iteration_bounds = array<i64: 1>, scalar_prefetch = 0 : i64, scratch_operands = 0 : i64, tpu.core_type = #tpu.core_type<tc>, window_params = [{pipeline_mode = #tpu.pipeline_mode<synchronous>, transform_indices = @transform_0, window_bounds = array<i64: 2, 5, 256>}, {pipeline_mode = #tpu.pipeline_mode<synchronous>, transform_indices = @transform_1, window_bounds = array<i64: 1, 5, 1>}, {pipeline_mode = #tpu.pipeline_mode<synchronous>, transform_indices = @transform_2, window_bounds = array<i64: 1, 5, 1>}, {pipeline_mode = #tpu.pipeline_mode<synchronous>, transform_indices = @transform_3, window_bounds = array<i64: 2, 5, 256>}]} {
    %c0 = arith.constant 0 : index
    %c0_0 = arith.constant 0 : index
    %c0_1 = arith.constant 0 : index
    %0 = vector.load %arg1[%c0, %c0_0, %c0_1] : memref<2x5x256xf32, #tpu.memory_space<vmem>>, vector<2x5x256xf32>
    %cst = arith.constant dense<0.000000e+00> : vector<2x5xf32>
    %1 = vector.multi_reduction <add>, %0, %cst [2] : vector<2x5x256xf32> to vector<2x5xf32>
    %2 = vector.shape_cast %1 : vector<2x5xf32> to vector<2x5x1xf32>
    %cst_2 = arith.constant dense<0.000000e+00> : vector<5x1xf32>
    %3 = vector.multi_reduction <add>, %2, %cst_2 [0] : vector<2x5x1xf32> to vector<5x1xf32>
    %4 = vector.shape_cast %3 : vector<5x1xf32> to vector<1x5x1xf32>
    %5 = arith.mulf %0, %0 : vector<2x5x256xf32>
    %cst_3 = arith.constant dense<0.000000e+00> : vector<2x5xf32>
    %6 = vector.multi_reduction <add>, %5, %cst_3 [2] : vector<2x5x256xf32> to vector<2x5xf32>
    %7 = vector.shape_cast %6 : vector<2x5xf32> to vector<2x5x1xf32>
    %cst_4 = arith.constant dense<0.000000e+00> : vector<5x1xf32>
    %8 = vector.multi_reduction <add>, %7, %cst_4 [0] : vector<2x5x1xf32> to vector<5x1xf32>
    %9 = vector.shape_cast %8 : vector<5x1xf32> to vector<1x5x1xf32>
    %cst_5 = arith.constant 0.001953125 : f32
    %10 = vector.broadcast %cst_5 : f32 to vector<1x5x1xf32>
    %11 = arith.mulf %4, %10 : vector<1x5x1xf32>
    %cst_6 = arith.constant 0.001953125 : f32
    %12 = vector.broadcast %cst_6 : f32 to vector<1x5x1xf32>
    %13 = arith.mulf %9, %12 : vector<1x5x1xf32>
    %14 = arith.mulf %11, %11 : vector<1x5x1xf32>
    %15 = arith.subf %13, %14 : vector<1x5x1xf32>
    %cst_7 = arith.constant 0.000000e+00 : f32
    %16 = vector.broadcast %cst_7 : f32 to vector<1x5x1xf32>
    %17 = arith.maximumf %15, %16 : vector<1x5x1xf32>
    %c0_8 = arith.constant 0 : index
    %c0_9 = arith.constant 0 : index
    %c0_10 = arith.constant 0 : index
    %18 = vector.load %arg2[%c0_8, %c0_9, %c0_10] : memref<1x5x1xf32, #tpu.memory_space<vmem>>, vector<1x5x1xf32>
    %cst_11 = arith.constant 9.99999974E-6 : f32
    %19 = vector.broadcast %cst_11 : f32 to vector<1x5x1xf32>
    %20 = arith.addf %17, %19 : vector<1x5x1xf32>
    %21 = math.rsqrt %20 : vector<1x5x1xf32>
    %22 = arith.mulf %18, %21 : vector<1x5x1xf32>
    %c0_12 = arith.constant 0 : index
    %c0_13 = arith.constant 0 : index
    %c0_14 = arith.constant 0 : index
    %23 = vector.load %arg3[%c0_12, %c0_13, %c0_14] : memref<1x5x1xf32, #tpu.memory_space<vmem>>, vector<1x5x1xf32>
    %24 = arith.mulf %11, %22 : vector<1x5x1xf32>
    %25 = arith.subf %23, %24 : vector<1x5x1xf32>
    %26 = vector.broadcast %22 : vector<1x5x1xf32> to vector<2x5x256xf32>
    %27 = arith.mulf %0, %26 : vector<2x5x256xf32>
    %28 = vector.broadcast %25 : vector<1x5x1xf32> to vector<2x5x256xf32>
    %29 = arith.addf %27, %28 : vector<2x5x256xf32>
    %c0_15 = arith.constant 0 : index
    %c0_16 = arith.constant 0 : index
    %c0_17 = arith.constant 0 : index
    %30 = vector.load %arg4[%c0_15, %c0_16, %c0_17] : memref<2x5x256xf32, #tpu.memory_space<vmem>>, vector<2x5x256xf32>
    tpu.vector_store %arg4[%c0_15, %c0_16, %c0_17], %29 {strides = array<i32>} : memref<2x5x256xf32, #tpu.memory_space<vmem>>, vector<2x5x256xf32>,
    return
  }
  func.func @transform_0(%arg0: i32) -> (i32, i32, i32) {
    %c0_i32 = arith.constant 0 : i32
    %c0_i32_0 = arith.constant 0 : i32
    %c0_i32_1 = arith.constant 0 : i32
    %c0_i32_2 = arith.constant 0 : i32
    return %c0_i32, %c0_i32_0, %c0_i32_1 : i32, i32, i32
  }
  func.func @transform_1(%arg0: i32) -> (i32, i32, i32) {
    %c0_i32 = arith.constant 0 : i32
    %c0_i32_0 = arith.constant 0 : i32
    %c0_i32_1 = arith.constant 0 : i32
    %c0_i32_2 = arith.constant 0 : i32
    return %c0_i32, %c0_i32_0, %c0_i32_1 : i32, i32, i32
  }
  func.func @transform_2(%arg0: i32) -> (i32, i32, i32) {
    %c0_i32 = arith.constant 0 : i32
    %c0_i32_0 = arith.constant 0 : i32
    %c0_i32_1 = arith.constant 0 : i32
    %c0_i32_2 = arith.constant 0 : i32
    return %c0_i32, %c0_i32_0, %c0_i32_1 : i32, i32, i32
  }
  func.func @transform_3(%arg0: i32) -> (i32, i32, i32) {
    %c0_i32 = arith.constant 0 : i32
    %c0_i32_0 = arith.constant 0 : i32
    %c0_i32_1 = arith.constant 0 : i32
    %c0_i32_2 = arith.constant 0 : i32
    return %c0_i32, %c0_i32_0, %c0_i32_1 : i32, i32, i32
  }
}

</mosaic_0001>

<bundles_post_ra>
// kernel: tpu_custom_call.1
= control target key start
LH: loop header
LB: loop body
LE: loop exit
PB: predicated region body
PF: predicated region fallthrough
CT: control target
= control target key end

     0   :  { %vm18_vm0 = vcmask 1044480   ;;  %v92_v20 = vmov 0   ;;  %s155_s0 = inlined_call_operand.vmem [shape: f32[2,5,256], index: 0, kind: input, shape index: {}]   ;;  %s156_s1 = inlined_call_operand.vmem [shape: f32[1,5,1], index: 1, kind: input, shape index: {}]   ;;  %s157_s2 = inlined_call_operand.vmem [shape: f32[1,5,1], index: 2, kind: input, shape index: {}]   ;;  %s158_s3 = inlined_call_operand.vmem [shape: f32[2,5,256], index: 3, kind: output, shape index: {}]  }
   0x1   :  { %v14_v0 = vld [vmem:[%s155_s0] sm:$0x1f]  ;;  %v15_v1 = vld [vmem:[%s155_s0 + $0x8] sm:$0x1f]  ;;  %v16_v2 = vld [vmem:[%s155_s0 + $0x10] sm:$0x1f]  ;;  %88 = vset.pattern.permute.xlu0 %v92_v20  ;;  %89 = vset.pattern.permute.xlu1 %v92_v20 }
   0x2   :  { %v19_v3 = vsel %vm18_vm0, %v14_v0, 0.0  ;;  %v20_v4 = vsel %vm18_vm0, %v15_v1, 0.0  ;;  %v32_v5 = vmul.f32 %v14_v0, %v14_v0  ;;  %v33_v6 = vmul.f32 %v15_v1, %v15_v1  ;;  %v17_v7 = vld [vmem:[%s155_s0 + $0x18] sm:$0x1f]  ;;  %v54_v37 = vld [vmem:[%s156_s1] sm:$0x1f] }
   0x3   :  { %v21_v8 = vadd.f32 %v20_v4, %v19_v3  ;;  %v24_v9 = vsel %vm18_vm0, %v16_v2, 0.0  ;;  %v25_v10 = vsel %vm18_vm0, %v17_v7, 0.0  ;;  %v34_v11 = vmul.f32 %v16_v2, %v16_v2  ;;  %v58_v40 = vld [vmem:[%s157_s2] sm:$0x1f] }
   0x4   :  { %v36_v12 = vsel %vm18_vm0, %v32_v5, 0.0  ;;  %v37_v13 = vsel %vm18_vm0, %v33_v6, 0.0  ;;  %v35_v14 = vmul.f32 %v17_v7, %v17_v7  ;;  %v26_v16 = vadd.f32 %v25_v10, %v24_v9 }
   0x5   :  { %22 = vadd.xlane.f32.xlu0 %v21_v8  ;;  %v38_v15 = vadd.f32 %v37_v13, %v36_v12  ;;  %v41_v17 = vsel %vm18_vm0, %v34_v11, 0.0 }
   0x6   :  { %v42_v18 = vsel %vm18_vm0, %v35_v14, 0.0 }
   0x7   :  { %39 = vadd.xlane.f32.xlu1 %v38_v15  ;;  %v43_v19 = vadd.f32 %v42_v18, %v41_v17 }
   0x9   :  { %27 = vadd.xlane.f32.xlu0 %v26_v16 }
   0xb   :  { %44 = vadd.xlane.f32.xlu1 %v43_v19 }
  0x8e   :  { %v23_v21 = vpop.xlane.xlu0 %22 }
  0x8f   :  { %v29_v24 = vsel %vm18_vm0, %v23_v21, 0.0 }
  0x90   :  { %v40_v22 = vpop.xlane.xlu1 %39 }
  0x91   :  { %v46_v28 = vsel %vm18_vm0, %v40_v22, 0.0 }
  0x92   :  { %v28_v23 = vpop.xlane.xlu0 %27 }
  0x93   :  { %v30_v25 = vsel %vm18_vm0, %v28_v23, 0.0 }
  0x94   :  { %v31_v26 = vadd.f32 %v30_v25, %v29_v24  ;;  %v45_v27 = vpop.xlane.xlu1 %44 }
  0x95   :  { %v47_v29 = vsel %vm18_vm0, %v45_v27, 0.0 }
  0x96   :  { %v49_v30 = vmul.f32 0.001953125, %v31_v26  ;;  %v48_v31 = vadd.f32 %v47_v29, %v46_v28 }
  0x98   :  { %v51_v32 = vmul.f32 %v49_v30, %v49_v30  ;;  %v50_v33 = vmul.f32 0.001953125, %v48_v31 }
  0x9a   :  { %v52_v34 = vsub.f32 %v50_v33, %v51_v32 }
  0x9c   :  { %v53_v35 = vmax.f32 %v52_v34, 0.0 }
  0x9e   :  { %v55_v36 = vadd.f32 1e-05, %v53_v35 }
  0xa0   :  { %90 = vrsqrt.f32 %v55_v36 }
  0xad   :  { %v91_v38 = vpop.eup %90 }
  0xae   :  { %v57_v39 = vmul.f32 %v91_v38, %v54_v37 }
  0xb0   :  { %63 = vperm.xlu0 %88, %v57_v39   ;;  %v59_v41 = vmul.f32 %v57_v39, %v49_v30 }
  0xb2   :  { %v60_v42 = vsub.f32 %v58_v40, %v59_v41 }
  0xb4   :  { %72 = vperm.xlu1 %89, %v60_v42  }
 0x12b   :  { %v64_v43 = vpop.permute.xlu0 %63 }
 0x12c   :  { %v66_v44 = vmul.f32 %v64_v43, %v14_v0  ;;  %v67_v45 = vmul.f32 %v64_v43, %v15_v1  ;;  %v68_v46 = vmul.f32 %v64_v43, %v16_v2  ;;  %v69_v47 = vmul.f32 %v64_v43, %v17_v7 }
 0x12f   :  { %v73_v48 = vpop.permute.xlu1 %72 }
 0x130   :  { %v75_v49 = vadd.f32 %v73_v48, %v66_v44  ;;  %v76_v50 = vadd.f32 %v73_v48, %v67_v45  ;;  %v77_v51 = vadd.f32 %v73_v48, %v68_v46  ;;  %v78_v52 = vadd.f32 %v73_v48, %v69_v47 }
 0x132   :  { %79 = vst [vmem:[%s158_s3] sm:$0x1f] %v75_v49  ;;  %80 = vst [vmem:[%s158_s3 + $0x8] sm:$0x1f] %v76_v50 }
 0x133   :  { %81 = vst [vmem:[%s158_s3 + $0x10] sm:$0x1f] %v77_v51  ;;  %82 = vst [vmem:[%s158_s3 + $0x18] sm:$0x1f] %v78_v52 }

</bundles_post_ra>
